<compile_context>
chip_gen: v7x
topology: tpu7x:2x2x1
jax: 0.10.0
libtpu: 0.0.40
codegen_flags: <defaults>
</compile_context>

<pallas_src>
import functools

import jax
import jax.numpy as jnp
from jax.experimental import pallas as pl
from jax.experimental.pallas import tpu as pltpu


def _round_up(v, m):
    return ((v + m - 1) // m) * m


# ---------------------------------------------------------------------------
# Kernel: (rows, D) x-tile @ (D, tn) weight-tile + (1, tn) bias -> (rows, tn)
# bf16 feeds, f32 MXU accumulate, f32 bias epilogue, cast to out dtype.
# ---------------------------------------------------------------------------
def _fused_linear_kernel(x_ref, w_ref, b_ref, o_ref):
    acc = jnp.dot(x_ref[...], w_ref[...], preferred_element_type=jnp.float32)
    o_ref[...] = (acc + b_ref[...]).astype(o_ref.dtype)


def _vmem_bytes(rows, d, tn, x_bytes=2, w_bytes=2, b_bytes=4, o_bytes=4):
    # Conservative: count every operand double-buffered (x is actually
    # fetched once when its block index is constant).
    return 2 * (rows * d * x_bytes + d * tn * w_bytes + tn * b_bytes
                + rows * tn * o_bytes)


@functools.partial(jax.jit, static_argnames=("tn", "tb", "out_dtype"))
def fused_linear(x_pad, w_fused, b_fused, *, tn, tb=None, out_dtype=jnp.float32):
    """y = x_pad @ w_fused + b_fused as one tiled pallas_call.

    x_pad:   (Bp, D)  bf16 (Bp a multiple of 8, and of tb if tb is given)
    w_fused: (D, Np)  bf16, Np % tn == 0, already in (in, out) layout
    b_fused: (1, Np)  f32

    tb=None -> whole batch resident in VMEM, 1-D grid over N
               (each weight tile is read from HBM exactly once).
    tb=int  -> 2-D grid with N OUTER / batch INNER so each weight tile stays
               VMEM-resident across the whole batch sweep.
    """
    Bp, D = x_pad.shape
    Np = w_fused.shape[1]
    assert Np % tn == 0
    n_tiles = Np // tn

    if tb is None:
        grid = (n_tiles,)
        in_specs = [
            pl.BlockSpec((Bp, D), lambda j: (0, 0)),      # x: whole, resident
            pl.BlockSpec((D, tn), lambda j: (0, j)),      # W: streamed once
            pl.BlockSpec((1, tn), lambda j: (0, j)),      # bias
        ]
        out_specs = pl.BlockSpec((Bp, tn), lambda j: (0, j))
        dims = ("parallel",)
        tile_rows = Bp
    else:
        assert Bp % tb == 0
        grid = (n_tiles, Bp // tb)                        # N outer, batch inner
        in_specs = [
            pl.BlockSpec((tb, D), lambda j, i: (i, 0)),
            pl.BlockSpec((D, tn), lambda j, i: (0, j)),   # resident across i
            pl.BlockSpec((1, tn), lambda j, i: (0, j)),
        ]
        out_specs = pl.BlockSpec((tb, tn), lambda j, i: (i, j))
        dims = ("parallel", "parallel")
        tile_rows = tb

    x_bytes = x_pad.dtype.itemsize
    w_bytes = w_fused.dtype.itemsize
    o_bytes = jnp.dtype(out_dtype).itemsize

    # Explicit scoped-VMEM limit: above v5e's 16 MiB default when needed, but
    # safely below v7x's 64 MiB physical VMEM.
    vmem_need = _vmem_bytes(tile_rows, D, tn, x_bytes, w_bytes, 4, o_bytes)
    vmem_limit = int(min(max(vmem_need * 5 // 4 + (2 << 20), 16 << 20), 60 << 20))

    cost = pl.CostEstimate(
        flops=2 * Bp * D * Np,
        transcendentals=0,
        # Read-once traffic (matches the schedule above).
        bytes_accessed=(Bp * D * x_bytes + D * Np * w_bytes
                        + Np * 4 + Bp * Np * o_bytes),
    )

    return pl.pallas_call(
        _fused_linear_kernel,
        out_shape=jax.ShapeDtypeStruct((Bp, Np), out_dtype),
        grid=grid,
        in_specs=in_specs,
        out_specs=out_specs,
        compiler_params=pltpu.CompilerParams(
            dimension_semantics=dims,
            vmem_limit_bytes=vmem_limit,
        ),
        cost_estimate=cost,
    )(x_pad, w_fused, b_fused)


# ---------------------------------------------------------------------------
# Module wrapper
# ---------------------------------------------------------------------------
class ViTDecoderPallas:
    """JAX/Pallas port of ViTDecoder with all heads fused into one bias-GEMM."""

    _VMEM_BUDGET = 40 << 20          # keeps tiles safe on v7x (64 MiB physical)
    _XLA_BAILOUT_MACS = 1 << 20      # below this, XLA's fused dot wins

    def __init__(self, data_type, data_size, latent_dim, key, *,
                 out_dtype=jnp.float32, param_dtype=jnp.bfloat16):
        self.data_type = list(data_type)
        self.data_size = [int(s) for s in data_size]
        self.latent_dim = int(latent_dim)
        self.length = sum(self.data_size)
        self.out_dtype = out_dtype

        # Per-head parameters in PyTorch nn.Linear convention (out, in); f32
        # masters kept for reference / inspection.
        self.params = []
        bound = 1.0 / (self.latent_dim ** 0.5)
        for size in self.data_size:
            key, wk, bk = jax.random.split(key, 3)
            w = jax.random.uniform(wk, (size, self.latent_dim), jnp.float32,
                                   minval=-bound, maxval=bound)
            b = jax.random.uniform(bk, (size,), jnp.float32,
                                   minval=-bound, maxval=bound)
            self.params.append((w, b))

        # --- Fuse once at init ------------------------------------------------
        # Optionally lane-align each head's column block to a multiple of 128 so
        # per-head output slices start on lane boundaries.  Only done when it
        # costs <= ~25% extra columns (tiny heads would pay up to 8x).
        raw_total = max(self.length, 1)
        aligned_sizes = [_round_up(s, 128) for s in self.data_size]
        self._head_aligned = sum(aligned_sizes) <= max(
            _round_up(raw_total, 128), int(1.25 * raw_total))
        col_sizes = aligned_sizes if self._head_aligned else self.data_size

        offs, acc = [], 0
        for s in col_sizes:
            offs.append(acc)
            acc += s
        self._offsets = offs
        n_base = acc

        w_cols, b_cols = [], []
        for (w, b), cols in zip(self.params, col_sizes):
            wt, bt = w.T, b                            # (D, size), (size,)
            if cols > wt.shape[1]:
                wt = jnp.pad(wt, ((0, 0), (0, cols - wt.shape[1])))
                bt = jnp.pad(bt, (0, cols - bt.shape[0]))
            w_cols.append(wt)
            b_cols.append(bt)
        w_fused = jnp.concatenate(w_cols, axis=1)      # (D, n_base) f32
        b_fused = jnp.concatenate(b_cols, axis=0)      # (n_base,)   f32

        # Lane tile: big and lane-dense; pad Np up to a multiple of tn so every
        # store is a full-width unmasked vst.
        n128 = _round_up(max(n_base, 1), 128)
        if n128 >= 4096:
            tn = 1024
        elif n128 >= 512:
            tn = 512
        else:
            tn = n128
        n_pad = _round_up(n128, tn)
        if n_pad > n_base:
            w_fused = jnp.pad(w_fused, ((0, 0), (0, n_pad - n_base)))
            b_fused = jnp.pad(b_fused, (0, n_pad - n_base))

        # bf16 weights halve the dominant HBM traffic and hit the native bf16
        # MXU path; bias stays f32 for the epilogue.
        self.w_fused = w_fused.astype(param_dtype)        # (D, Np)
        self.b_fused = b_fused.reshape(1, n_pad).astype(jnp.float32)
        self.n_pad = n_pad
        self.tn = tn

    # ------------------------------------------------------------------ #
    def _schedule(self, batch):
        """Pick (Bp, tb) — tb=None means whole-batch-resident (path A)."""
        d, tn = self.latent_dim, self.tn
        bp_min = _round_up(max(batch, 1), 8)

        # Path A: whole (padded) batch resident in VMEM, 1-D grid over N.
        if _vmem_bytes(bp_min, d, tn) <= self._VMEM_BUDGET:
            return bp_min, None

        # Path B: 2-D grid, N outer / batch inner; weight tile stays resident
        # across the batch sweep.  Choose tb so batch padding waste is small.
        for tb in (512, 256, 128, 64, 32, 16, 8):
            if _vmem_bytes(tb, d, tn) > self._VMEM_BUDGET:
                continue
            bp = _round_up(max(batch, 1), tb)
            if bp - batch <= max(batch // 8, 8):
                return bp, tb
        return bp_min, 8

    # ------------------------------------------------------------------ #
    def __call__(self, x, *, force_pallas=False):
        # Mirrors: res = [dense(x) for dense in self.decoder_latent]
        orig_lead = x.shape[:-1]
        if x.ndim != 2:
            x = x.reshape(-1, x.shape[-1])
        B, D = x.shape
        assert D == self.latent_dim

        x_feed = x.astype(self.w_fused.dtype)

        if (not force_pallas) and (B * D * self.n_pad < self._XLA_BAILOUT_MACS):
            # Tiny problem: pallas_call fixed overhead exceeds the whole GEMM.
            # Same bf16 feeds / f32 accumulate, so numerics match the kernel.
            y = jnp.dot(x_feed, self.w_fused, preferred_element_type=jnp.float32)
            y = (y + self.b_fused).astype(self.out_dtype)
        else:
            bp, tb = self._schedule(B)
            if bp > B:
                x_feed = jnp.pad(x_feed, ((0, bp - B), (0, 0)))
            y = fused_linear(x_feed, self.w_fused, self.b_fused,
                             tn=self.tn, tb=tb, out_dtype=self.out_dtype)
            y = y[:B]

        outs = [y[:, o:o + s] for o, s in zip(self._offsets, self.data_size)]
        if orig_lead != (B,):
            outs = [o.reshape(orig_lead + (o.shape[-1],)) for o in outs]
        return outs


# ---------------------------------------------------------------------------
if __name__ == "__main__":
    key = jax.random.PRNGKey(0)

    # ---- Test 1: small shapes matching the module, force the Pallas path. ----
    batch, latent_dim = 2, 32
    data_type = ["mrna", "mirna", "meth"]
    data_size = [16, 8, 24]

    key, xkey, pkey = jax.random.split(key, 3)
    x = jax.random.normal(xkey, (batch, latent_dim), jnp.float32)
    decoder = ViTDecoderPallas(data_type, data_size, latent_dim, pkey)

    outs = decoder(x, force_pallas=True)
    outs = [jax.block_until_ready(o) for o in outs]
    outs_xla = decoder(x)                      # tiny-shape bail-out path
    outs_xla = [jax.block_until_ready(o) for o in outs_xla]

    for o, o_xla, size, (w, b) in zip(outs, outs_xla, data_size, decoder.params):
        assert o.shape == (batch, size), o.shape
        # Reference with the same bf16 feeds / f32 accumulate (tight).
        ref_bf16 = jnp.dot(x.astype(jnp.bfloat16), w.T.astype(jnp.bfloat16),
                           preferred_element_type=jnp.float32) + b
        assert jnp.allclose(o, ref_bf16, atol=1e-4, rtol=1e-4)
        # f32 nn.Linear reference (bf16 weight storage -> ~1e-2 rel. drift).
        ref_f32 = x @ w.T + b
        assert jnp.allclose(o, ref_f32, atol=3e-2, rtol=3e-2)
        # Pallas path and XLA bail-out path must agree.
        assert jnp.allclose(o, o_xla, atol=1e-4, rtol=1e-4)

    # ---- Test 2: slightly larger shapes exercising the natural Pallas path. --
    batch2, latent2 = 32, 128
    data_size2 = [300, 200, 140]
    key, xkey2, pkey2 = jax.random.split(key, 3)
    x2 = jax.random.normal(xkey2, (batch2, latent2), jnp.float32)
    decoder2 = ViTDecoderPallas(["a", "b", "c"], data_size2, latent2, pkey2)

    outs2 = decoder2(x2)
    outs2 = [jax.block_until_ready(o) for o in outs2]
    for o, size, (w, b) in zip(outs2, data_size2, decoder2.params):
        assert o.shape == (batch2, size), o.shape
        ref_bf16 = jnp.dot(x2.astype(jnp.bfloat16), w.T.astype(jnp.bfloat16),
                           preferred_element_type=jnp.float32) + b
        assert jnp.allclose(o, ref_bf16, atol=1e-3, rtol=1e-3)
        ref_f32 = x2 @ w.T + b
        assert jnp.allclose(o, ref_f32, atol=3e-2, rtol=3e-2)

    print("KERNEL_OK")
</pallas_src>

<mosaic_0001>
module attributes {stable_mosaic.version = 11 : i64} {
  func.func @_fused_linear_kernel(%arg0: i32, %arg1: memref<8x32xbf16, #tpu.memory_space<vmem>>, %arg2: memref<32x128xbf16, #tpu.memory_space<vmem>>, %arg3: memref<1x128xf32, #tpu.memory_space<vmem>>, %arg4: memref<8x128xf32, #tpu.memory_space<vmem>>) attributes {dimension_semantics = [#tpu.dimension_semantics<parallel>], iteration_bounds = array<i64: 1>, scalar_prefetch = 0 : i64, scratch_operands = 0 : i64, tpu.core_type = #tpu.core_type<tc>, window_params = [{pipeline_mode = #tpu.pipeline_mode<synchronous>, transform_indices = @transform_0, window_bounds = array<i64: 8, 32>}, {transform_indices = @transform_1, window_bounds = array<i64: 32, 128>}, {transform_indices = @transform_2, window_bounds = array<i64: 1, 128>}, {transform_indices = @transform_3, window_bounds = array<i64: 8, 128>}]} {
    %c0 = arith.constant 0 : index
    %c0_0 = arith.constant 0 : index
    %0 = vector.load %arg1[%c0, %c0_0] : memref<8x32xbf16, #tpu.memory_space<vmem>>, vector<8x32xbf16>
    %c0_1 = arith.constant 0 : index
    %c0_2 = arith.constant 0 : index
    %1 = vector.load %arg2[%c0_1, %c0_2] : memref<32x128xbf16, #tpu.memory_space<vmem>>, vector<32x128xbf16>
    %cst = arith.constant dense<0.000000e+00> : vector<8x128xf32>
    %2 = tpu.matmul %0, %1, %cst {dimension_numbers = #tpu.dot_dimension_numbers<[1], [0], [0], [1], [0, 0, 1, 1], [], []>} : vector<8x32xbf16>, vector<32x128xbf16>, vector<8x128xf32> -> vector<8x128xf32>
    %c0_3 = arith.constant 0 : index
    %c0_4 = arith.constant 0 : index
    %3 = vector.load %arg3[%c0_3, %c0_4] : memref<1x128xf32, #tpu.memory_space<vmem>>, vector<1x128xf32>
    %4 = vector.broadcast %3 : vector<1x128xf32> to vector<8x128xf32>
    %5 = arith.addf %2, %4 : vector<8x128xf32>
    %c0_5 = arith.constant 0 : index
    %c0_6 = arith.constant 0 : index
    %6 = vector.load %arg4[%c0_5, %c0_6] : memref<8x128xf32, #tpu.memory_space<vmem>>, vector<8x128xf32>
    tpu.vector_store %arg4[%c0_5, %c0_6], %5 {strides = array<i32>} : memref<8x128xf32, #tpu.memory_space<vmem>>, vector<8x128xf32>,
    return
  }
  func.func @transform_0(%arg0: i32) -> (i32, i32) {
    %c0_i32 = arith.constant 0 : i32
    %c0_i32_0 = arith.constant 0 : i32
    %c0_i32_1 = arith.constant 0 : i32
    return %c0_i32, %c0_i32_0 : i32, i32
  }
  func.func @transform_1(%arg0: i32) -> (i32, i32) {
    %c0_i32 = arith.constant 0 : i32
    %c0_i32_0 = arith.constant 0 : i32
    return %c0_i32, %arg0 : i32, i32
  }
  func.func @transform_2(%arg0: i32) -> (i32, i32) {
    %c0_i32 = arith.constant 0 : i32
    %c0_i32_0 = arith.constant 0 : i32
    return %c0_i32, %arg0 : i32, i32
  }
  func.func @transform_3(%arg0: i32) -> (i32, i32) {
    %c0_i32 = arith.constant 0 : i32
    %c0_i32_0 = arith.constant 0 : i32
    return %c0_i32, %arg0 : i32, i32
  }
}

</mosaic_0001>

<bundles_post_ra>
// kernel: fused_linear.1
= control target key start
LH: loop header
LB: loop body
LE: loop exit
PB: predicated region body
PF: predicated region fallthrough
CT: control target
= control target key end

     0   :  { %8 = vsyncpa [#allocation3], 0  ;;  %s296_s0 = inlined_call_operand.hbm [shape: bf16[8,32], index: 0, kind: input, shape index: {}]   ;;  %s297_s1 = inlined_call_operand.hbm [shape: bf16[32,128], index: 1, kind: input, shape index: {}]   ;;  %s298_s2 = inlined_call_operand.vmem [shape: f32[1,128], index: 2, kind: input, shape index: {}]   ;;  %s299_s3 = inlined_call_operand.hbm [shape: f32[8,128], index: 3, kind: output, shape index: {}]  }
   0x1   :  { %9 = vsyncpa [#allocation6], 0 }
   0x2   :  { %10 = vsyncpa [#allocation4], 0  ;;  %s223_s12 = smov [#allocation2]   ;;  %s224_s14 = smov [#allocation5]  }
   0x3   :  { %s17_s13 = sshll.u32 %s223_s12, 4  ;;  %s26_s15 = sshll.u32 %s224_s14, 4  ;;  %s18_s13 = int_to_ptr.vmem [resolvable:$true] %s17_s13  ;;  %s250_s15 = int_to_ptr.vmem [resolvable:$true] %s26_s15 }
   0x4   :  { %s151_s18 = scalar_lea.hbm %s296_s0, 64 }
   0x5   :  { %p152_p0 = scmp.ne.s32.totalorder %s296_s0, %s151_s18  ;;  %p155_p1 = scmp.lt.u32.totalorder %s151_s18, %s296_s0 }
   0x7   :  { %p157_p2 = pnand %p155_p1, %p152_p0 }
   0x9   :  { %160 = shalt.err (!%p157_p2)
}
   0xa   :  { %s161_s23 = scalar_lea.vmem %s18_s13, 64  ;;  %p166_p4 = scmp.lt.s32.totalorder %s18_s13, %s18_s13 }
   0xb   :  { %p162_p3 = scmp.ne.s32.totalorder %s18_s13, %s161_s23  ;;  %p167_p5 = scmp.lt.s32.totalorder %s161_s23, %s161_s23 }
   0xd   :  { %p168_p6 = por %p167_p5, %p166_p4 }
   0xf   :  { %p169_p7 = pnand %p168_p6, %p162_p3 }
  0x11   :  { %172 = shalt.err (!%p169_p7)
}
  0x12   :  { %20 = dma.hbm_to_vmem [thread:$0]  %s296_s0, 64, %s18_s13, [#allocation3]  }
  0x13   :  { %s173_s28 = scalar_lea.hbm %s297_s1, 256 }
  0x14   :  { %p174_p8 = scmp.ne.s32.totalorder %s297_s1, %s173_s28  ;;  %p177_p9 = scmp.lt.u32.totalorder %s173_s28, %s297_s1 }
  0x16   :  { %p179_p10 = pnand %p177_p9, %p174_p8 }
  0x18   :  { %182 = shalt.err (!%p179_p10)
}
  0x19   :  { %s183_s6 = scalar_lea.vmem %s250_s15, 256  ;;  %p188_p12 = scmp.lt.s32.totalorder %s250_s15, %s250_s15 }
  0x1a   :  { %p184_p11 = scmp.ne.s32.totalorder %s250_s15, %s183_s6  ;;  %p189_p13 = scmp.lt.s32.totalorder %s183_s6, %s183_s6 }
  0x1c   :  { %p190_p0 = por %p189_p13, %p188_p12 }
  0x1e   :  { %p191_p1 = pnand %p190_p0, %p184_p11 }
  0x20   :  { %194 = shalt.err (!%p191_p1)
}
  0x21   :  { %s225_s0 = smov 64   ;;  %s226_s7 = smov 4  }
  0x22   :  { %32 = dma.hbm_to_vmem [thread:$0]  %s297_s1, 256, %s250_s15, [#allocation6], %s225_s0, %s225_s0, %s226_s7  }
  0x23   :  { %217 = dma.done.wait [#allocation3], 64  }
  0x24   :  { %218 = vsyncadd [#allocation3], 4294967232 }
  0x25   :  { %219 = dma.done.wait [#allocation6], 256  }
  0x26   :  { %220 = vsyncadd [#allocation6], 4294967040  ;;  %v227_v0 = vmov 0.0   ;;  %vm228_vm0 = vmmov 0   ;;  %v149_v1 = vld [vmem:[#allocation5] sm:$0xff]   ;;  %v150_v2 = vld [vmem:[#allocation5 + $0x8] sm:$0xff]  }
  0x27   :  { %134 = vmatprep.subr.bf16.mxu0 %v227_v0  ;;  %138 = vmatprep.mubr.msk.bf16.mxu0 %vm228_vm0, %v227_v0  ;;  %v42_v3 = vld [vmem:[#allocation2] sm:$0xf]  ;;  %vm66_vm1 = vcmask 261120   ;;  %s229_s1 = smov [#allocation7]  }
  0x28   :  { %135 = vmatpush3.bf16.msra.mxu0 %v149_v1  ;;  %v127_v4 = vld [vmem:[%s298_s2] ss:$0 sm:$0xff]  ;;  %s117_s12 = sshll.u32 %s229_s1, 4  ;;  %s118_s12 = int_to_ptr.vmem [resolvable:$true] %s117_s12 }
  0x29   :  { %136 = vmatprep.subr.bf16.mxu0 %v227_v0  ;;  %s195_s13 = scalar_lea.vmem %s118_s12, 128  ;;  %p200_p3 = scmp.lt.s32.totalorder %s118_s12, %s118_s12 }
  0x2a   :  { %p196_p2 = scmp.ne.s32.totalorder %s118_s12, %s195_s13  ;;  %p201_p4 = scmp.lt.s32.totalorder %s195_s13, %s195_s13 }
  0x2c   :  { %137 = vmatpush3.bf16.msra.mxu0 %v150_v2  ;;  %p202_p5 = por %p201_p4, %p200_p3 }
  0x2e   :  { %p203_p6 = pnand %p202_p5, %p196_p2 }
  0x2f   :  { %139 = vmatmul.mubr.msk.bf16.vlgmr.msra.gmra.mrb[0].mxu0 %vm66_vm1, %v42_v3 }
 0x102   :  { %v104_v5 = vpop.f32.mrb[0].mxu0 }
 0x103   :  { %v105_v6 = vadd.f32 %v127_v4, %v104_v5  ;;  %v140_v7 = vpop.f32.mrb[1].mxu0 }
 0x104   :  { %v107_v8 = vpop.f32.mrb[2].mxu0 }
 0x105   :  { %110 = vst [vmem:[#allocation7] sm:$0xff] %v105_v6  ;;  %v141_v9 = vpop.f32.mrb[3].mxu0 }
 0x106   :  { %206 = shalt.err (!%p203_p6)
}
 0x107   :  { %s207_s2 = scalar_lea.hbm %s299_s3, 128 }
 0x108   :  { %p208_p7 = scmp.ne.s32.totalorder %s299_s3, %s207_s2  ;;  %p211_p8 = scmp.lt.u32.totalorder %s207_s2, %s299_s3 }
 0x10a   :  { %p213_p9 = pnand %p211_p8, %p208_p7 }
 0x10c   :  { %216 = shalt.err (!%p213_p9)
}
 0x10d   :  { %120 = dma.vmem_to_hbm [thread:$0]  %s118_s12, 128, %s299_s3, [#allocation4]  }
 0x10e   :  { %221 = dma.done.wait [#allocation4], 128  }
 0x10f   :  { %222 = vsyncadd [#allocation4], 4294967168 }
 0x110   :  { %124 = vsyncpa [#allocation3], 1 }
 0x111   :  { %125 = vsyncpa [#allocation6], 1 }
 0x112   :  { %126 = vsyncpa [#allocation4], 1 }

</bundles_post_ra>
